<compile_context>
chip_gen: v6e
topology: v6e:2x2x1
jax: 0.10.0
libtpu: 0.0.40
codegen_flags: <defaults>
</compile_context>

<pallas_src>
import jax
import jax.numpy as jnp
from jax.experimental import pallas as pl
from jax.experimental.pallas import tpu as pltpu

# ---------------------------------------------------------------------------
# Problem sizes (small, consistent with the module semantics)
# ---------------------------------------------------------------------------
B = 2          # batch
S = 8          # sequence length
H = 32         # hidden_size of the (synthetic) pretrained model
C4 = 4 * H     # concat of last-4 hidden states  -> 128 (lane-dense)
C8 = 8 * H     # cat(mean_pool, max_pool)        -> 256
D1 = 1024      # linear1 out
D2 = 14        # linear2 out (num classes)
NPAD = 128     # lane-dense padding of the class dim
TB = 8         # batch tile per grid step (sublane-aligned)
LN_EPS = 1e-5  # torch.nn.LayerNorm default


# ---------------------------------------------------------------------------
# Pallas kernel: pooling + linear1 + layernorm + relu + linear2
# ---------------------------------------------------------------------------
def head_kernel(h_ref,        # [TB, S, 4H] f32  lane-dense concat of last-4 states
                w1_ref,       # [8H, 1024]  bf16 linear1 weight
                b1_ref,       # [1, 1024]   f32
                g_ref,        # [1, 1024]   f32  LayerNorm gamma
                beta_ref,     # [1, 1024]   f32  LayerNorm beta
                w2_ref,       # [1024, 128] bf16 linear2 weight (lane-padded 14->128)
                b2_ref,       # [1, 128]    f32  (lane-padded)
                out_ref):     # [TB, 128]   f32  (lane-padded logits)
    h = h_ref[...]                                        # [TB, S, 4H] f32

    # torch.mean(., dim=1) / torch.max(., dim=1).values -> sublane reductions
    mean_p = jnp.mean(h, axis=1)                          # [TB, 4H]
    max_p = jnp.max(h, axis=1)                            # [TB, 4H]

    # cat((mean, max), 1): lane-aligned (128 | 128) concat -> [TB, 8H]
    pooled = jnp.concatenate([mean_p, max_p], axis=-1)

    # Linear1: bf16 activations x bf16 weights, f32 accumulation on the MXU
    y = jnp.dot(pooled.astype(jnp.bfloat16), w1_ref[...],
                preferred_element_type=jnp.float32) + b1_ref[...]

    # LayerNorm over last dim (1024), biased variance like torch (f32 VPU/EUP)
    mu = jnp.mean(y, axis=-1, keepdims=True)
    var = jnp.mean((y - mu) * (y - mu), axis=-1, keepdims=True)
    yn = (y - mu) * jax.lax.rsqrt(var + LN_EPS)
    yn = yn * g_ref[...] + beta_ref[...]

    # ReLU ; Dropout is identity at inference
    yr = jnp.maximum(yn, 0.0)

    # Linear2: bf16 x bf16 -> f32, lane-dense padded output -> unmasked stores
    out = jnp.dot(yr.astype(jnp.bfloat16), w2_ref[...],
                  preferred_element_type=jnp.float32) + b2_ref[...]
    out_ref[...] = out.astype(out_ref.dtype)


# ---------------------------------------------------------------------------
# One-time parameter preparation (bf16 weights, lane padding, bias reshape)
# ---------------------------------------------------------------------------
def prepare_params(w1, b1, gamma, beta, w2, b2):
    w1_bf16 = w1.astype(jnp.bfloat16)                              # [8H, 1024]
    w2_bf16 = jnp.pad(w2, ((0, 0), (0, NPAD - D2))).astype(jnp.bfloat16)  # [1024, 128]
    b2_pad = jnp.pad(b2, (0, NPAD - D2)).reshape(1, NPAD)          # [1, 128]
    return (w1_bf16, b1.reshape(1, D1), gamma.reshape(1, D1),
            beta.reshape(1, D1), w2_bf16, b2_pad)


@jax.jit
def bert_last_four_mean_max_head(last4, params):
    """last4: [4, B, S, H] stack of the last four hidden states (h[-1] first)."""
    w1_bf16, b1r, gr, betar, w2_bf16, b2r = params
    b = last4.shape[1]

    # Lane-dense concat (torch.cat((h[-1],h[-2],h[-3],h[-4]), -1)) done by XLA,
    # fuses with the producer; kernel then sees a 128-lane-dense input.
    h_cat = jnp.concatenate([last4[0], last4[1], last4[2], last4[3]], axis=-1)

    # Pad batch to a multiple of the batch tile (padded rows are sliced off).
    b_pad = pl.cdiv(b, TB) * TB
    h_cat = jnp.pad(h_cat, ((0, b_pad - b), (0, 0), (0, 0)))

    const2 = lambda i: (0, 0)   # weights/biases: fetched once, VMEM-resident
    out_pad = pl.pallas_call(
        head_kernel,
        out_shape=jax.ShapeDtypeStruct((b_pad, NPAD), jnp.float32),
        grid=(b_pad // TB,),
        in_specs=[
            pl.BlockSpec((TB, S, C4), lambda i: (i, 0, 0)),
            pl.BlockSpec((C8, D1), const2),
            pl.BlockSpec((1, D1), const2),
            pl.BlockSpec((1, D1), const2),
            pl.BlockSpec((1, D1), const2),
            pl.BlockSpec((D1, NPAD), const2),
            pl.BlockSpec((1, NPAD), const2),
        ],
        out_specs=pl.BlockSpec((TB, NPAD), lambda i: (i, 0)),
        compiler_params=pltpu.CompilerParams(
            dimension_semantics=("parallel",)),
    )(h_cat, w1_bf16, b1r, gr, betar, w2_bf16, b2r)
    return out_pad[:b, :D2]                                        # [B, 14]


# ---------------------------------------------------------------------------
# Pure-JAX reference (mirrors the torch forward, eval mode)
# ---------------------------------------------------------------------------
def reference(last4, w1, b1, gamma, beta, w2, b2):
    h_cat = jnp.concatenate([last4[0], last4[1], last4[2], last4[3]], axis=-1)
    mean_p = jnp.mean(h_cat, axis=1)
    max_p = jnp.max(h_cat, axis=1)
    x = jnp.concatenate([mean_p, max_p], axis=1)                   # [B, 8H]
    y = jnp.dot(x, w1, precision=jax.lax.Precision.HIGHEST) + b1
    mu = jnp.mean(y, axis=-1, keepdims=True)
    var = jnp.mean((y - mu) ** 2, axis=-1, keepdims=True)
    yn = (y - mu) / jnp.sqrt(var + LN_EPS) * gamma + beta
    yr = jnp.maximum(yn, 0.0)
    return jnp.dot(yr, w2, precision=jax.lax.Precision.HIGHEST) + b2


if __name__ == "__main__":
    key = jax.random.PRNGKey(0)
    k_hs, k_w1, k_b1, k_w2, k_b2 = jax.random.split(key, 5)

    # Synthetic "pretrained model" last four hidden states: [4, B, S, H]
    # (index 0 plays the role of hidden_states[-1], etc.)
    last4 = jax.random.normal(k_hs, (4, B, S, H), dtype=jnp.float32)

    # Deterministic parameter init (shapes from the module __init__)
    w1 = jax.random.normal(k_w1, (C8, D1), dtype=jnp.float32) * 0.02
    b1 = jax.random.normal(k_b1, (D1,), dtype=jnp.float32) * 0.02
    gamma = jnp.ones((D1,), dtype=jnp.float32)
    beta = jnp.zeros((D1,), dtype=jnp.float32)
    w2 = jax.random.normal(k_w2, (D1, D2), dtype=jnp.float32) * 0.02
    b2 = jax.random.normal(k_b2, (D2,), dtype=jnp.float32) * 0.02

    params = prepare_params(w1, b1, gamma, beta, w2, b2)

    out = jax.block_until_ready(bert_last_four_mean_max_head(last4, params))

    # Reference uses the same bf16-rounded weights but f32 activations; the
    # kernel additionally rounds the (tiny) activations to bf16 for the MXU,
    # so the tolerance is loosened accordingly (per review note).
    w1_r = params[0].astype(jnp.float32)
    w2_r = params[4].astype(jnp.float32)[:, :D2]
    ref = reference(last4, w1_r, b1, gamma, beta, w2_r, b2)

    assert out.shape == (B, D2)
    assert jnp.allclose(out, ref, atol=1e-2, rtol=1e-2), (out, ref)

    print("KERNEL_OK")
</pallas_src>

<mosaic_0001>
module attributes {stable_mosaic.version = 11 : i64} {
  func.func @head_kernel(%arg0: i32, %arg1: memref<8x8x128xf32, #tpu.memory_space<vmem>>, %arg2: memref<256x1024xbf16, #tpu.memory_space<vmem>>, %arg3: memref<1x1024xf32, #tpu.memory_space<vmem>>, %arg4: memref<1x1024xf32, #tpu.memory_space<vmem>>, %arg5: memref<1x1024xf32, #tpu.memory_space<vmem>>, %arg6: memref<1024x128xbf16, #tpu.memory_space<vmem>>, %arg7: memref<1x128xf32, #tpu.memory_space<vmem>>, %arg8: memref<8x128xf32, #tpu.memory_space<vmem>>) attributes {dimension_semantics = [#tpu.dimension_semantics<parallel>], iteration_bounds = array<i64: 1>, scalar_prefetch = 0 : i64, scratch_operands = 0 : i64, tpu.core_type = #tpu.core_type<tc>, window_params = [{transform_indices = @transform_0, window_bounds = array<i64: 8, 8, 128>}, {pipeline_mode = #tpu.pipeline_mode<synchronous>, transform_indices = @transform_1, window_bounds = array<i64: 256, 1024>}, {pipeline_mode = #tpu.pipeline_mode<synchronous>, transform_indices = @transform_2, window_bounds = array<i64: 1, 1024>}, {pipeline_mode = #tpu.pipeline_mode<synchronous>, transform_indices = @transform_3, window_bounds = array<i64: 1, 1024>}, {pipeline_mode = #tpu.pipeline_mode<synchronous>, transform_indices = @transform_4, window_bounds = array<i64: 1, 1024>}, {pipeline_mode = #tpu.pipeline_mode<synchronous>, transform_indices = @transform_5, window_bounds = array<i64: 1024, 128>}, {pipeline_mode = #tpu.pipeline_mode<synchronous>, transform_indices = @transform_6, window_bounds = array<i64: 1, 128>}, {transform_indices = @transform_7, window_bounds = array<i64: 8, 128>}]} {
    %c0 = arith.constant 0 : index
    %c0_0 = arith.constant 0 : index
    %c0_1 = arith.constant 0 : index
    %0 = vector.load %arg1[%c0, %c0_0, %c0_1] : memref<8x8x128xf32, #tpu.memory_space<vmem>>, vector<8x8x128xf32>
    %cst = arith.constant dense<0.000000e+00> : vector<8x128xf32>
    %1 = vector.multi_reduction <add>, %0, %cst [1] : vector<8x8x128xf32> to vector<8x128xf32>
    %cst_2 = arith.constant 8.000000e+00 : f32
    %2 = vector.broadcast %cst_2 : f32 to vector<8x128xf32>
    %3 = arith.divf %1, %2 : vector<8x128xf32>
    %cst_3 = arith.constant dense<0xFF800000> : vector<8x128xf32>
    %4 = vector.multi_reduction <maximumf>, %0, %cst_3 [1] : vector<8x8x128xf32> to vector<8x128xf32>
    %5 = tpu.concatenate %3, %4 in 1 : vector<8x128xf32>, vector<8x128xf32> -> vector<8x256xf32>
    %6 = arith.truncf %5 : vector<8x256xf32> to vector<8x256xbf16>
    %c0_4 = arith.constant 0 : index
    %c0_5 = arith.constant 0 : index
    %7 = vector.load %arg2[%c0_4, %c0_5] : memref<256x1024xbf16, #tpu.memory_space<vmem>>, vector<256x1024xbf16>
    %cst_6 = arith.constant dense<0.000000e+00> : vector<8x1024xf32>
    %8 = tpu.matmul %6, %7, %cst_6 {dimension_numbers = #tpu.dot_dimension_numbers<[1], [0], [0], [1], [0, 0, 1, 1], [], []>} : vector<8x256xbf16>, vector<256x1024xbf16>, vector<8x1024xf32> -> vector<8x1024xf32>
    %c0_7 = arith.constant 0 : index
    %c0_8 = arith.constant 0 : index
    %9 = vector.load %arg3[%c0_7, %c0_8] : memref<1x1024xf32, #tpu.memory_space<vmem>>, vector<1x1024xf32>
    %10 = vector.broadcast %9 : vector<1x1024xf32> to vector<8x1024xf32>
    %11 = arith.addf %8, %10 : vector<8x1024xf32>
    %cst_9 = arith.constant dense<0.000000e+00> : vector<8xf32>
    %12 = vector.multi_reduction <add>, %11, %cst_9 [1] : vector<8x1024xf32> to vector<8xf32>
    %13 = vector.shape_cast %12 : vector<8xf32> to vector<8x1xf32>
    %cst_10 = arith.constant 1.024000e+03 : f32
    %14 = vector.broadcast %cst_10 : f32 to vector<8x1xf32>
    %15 = arith.divf %13, %14 : vector<8x1xf32>
    %16 = vector.broadcast %15 : vector<8x1xf32> to vector<8x1024xf32>
    %17 = arith.subf %11, %16 : vector<8x1024xf32>
    %18 = vector.broadcast %15 : vector<8x1xf32> to vector<8x1024xf32>
    %19 = arith.subf %11, %18 : vector<8x1024xf32>
    %20 = arith.mulf %17, %19 : vector<8x1024xf32>
    %cst_11 = arith.constant dense<0.000000e+00> : vector<8xf32>
    %21 = vector.multi_reduction <add>, %20, %cst_11 [1] : vector<8x1024xf32> to vector<8xf32>
    %22 = vector.shape_cast %21 : vector<8xf32> to vector<8x1xf32>
    %cst_12 = arith.constant 1.024000e+03 : f32
    %23 = vector.broadcast %cst_12 : f32 to vector<8x1xf32>
    %24 = arith.divf %22, %23 : vector<8x1xf32>
    %25 = vector.broadcast %15 : vector<8x1xf32> to vector<8x1024xf32>
    %26 = arith.subf %11, %25 : vector<8x1024xf32>
    %cst_13 = arith.constant 9.99999974E-6 : f32
    %27 = vector.broadcast %cst_13 : f32 to vector<8x1xf32>
    %28 = arith.addf %24, %27 : vector<8x1xf32>
    %29 = math.rsqrt %28 : vector<8x1xf32>
    %30 = vector.broadcast %29 : vector<8x1xf32> to vector<8x1024xf32>
    %31 = arith.mulf %26, %30 : vector<8x1024xf32>
    %c0_14 = arith.constant 0 : index
    %c0_15 = arith.constant 0 : index
    %32 = vector.load %arg4[%c0_14, %c0_15] : memref<1x1024xf32, #tpu.memory_space<vmem>>, vector<1x1024xf32>
    %33 = vector.broadcast %32 : vector<1x1024xf32> to vector<8x1024xf32>
    %34 = arith.mulf %31, %33 : vector<8x1024xf32>
    %c0_16 = arith.constant 0 : index
    %c0_17 = arith.constant 0 : index
    %35 = vector.load %arg5[%c0_16, %c0_17] : memref<1x1024xf32, #tpu.memory_space<vmem>>, vector<1x1024xf32>
    %36 = vector.broadcast %35 : vector<1x1024xf32> to vector<8x1024xf32>
    %37 = arith.addf %34, %36 : vector<8x1024xf32>
    %cst_18 = arith.constant 0.000000e+00 : f32
    %38 = vector.broadcast %cst_18 : f32 to vector<8x1024xf32>
    %39 = arith.maximumf %37, %38 : vector<8x1024xf32>
    %40 = arith.truncf %39 : vector<8x1024xf32> to vector<8x1024xbf16>
    %c0_19 = arith.constant 0 : index
    %c0_20 = arith.constant 0 : index
    %41 = vector.load %arg6[%c0_19, %c0_20] : memref<1024x128xbf16, #tpu.memory_space<vmem>>, vector<1024x128xbf16>
    %cst_21 = arith.constant dense<0.000000e+00> : vector<8x128xf32>
    %42 = tpu.matmul %40, %41, %cst_21 {dimension_numbers = #tpu.dot_dimension_numbers<[1], [0], [0], [1], [0, 0, 1, 1], [], []>} : vector<8x1024xbf16>, vector<1024x128xbf16>, vector<8x128xf32> -> vector<8x128xf32>
    %c0_22 = arith.constant 0 : index
    %c0_23 = arith.constant 0 : index
    %43 = vector.load %arg7[%c0_22, %c0_23] : memref<1x128xf32, #tpu.memory_space<vmem>>, vector<1x128xf32>
    %44 = vector.broadcast %43 : vector<1x128xf32> to vector<8x128xf32>
    %45 = arith.addf %42, %44 : vector<8x128xf32>
    %c0_24 = arith.constant 0 : index
    %c0_25 = arith.constant 0 : index
    %46 = vector.load %arg8[%c0_24, %c0_25] : memref<8x128xf32, #tpu.memory_space<vmem>>, vector<8x128xf32>
    tpu.vector_store %arg8[%c0_24, %c0_25], %45 {strides = array<i32>} : memref<8x128xf32, #tpu.memory_space<vmem>>, vector<8x128xf32>,
    return
  }
  func.func @transform_0(%arg0: i32) -> (i32, i32, i32) {
    %c0_i32 = arith.constant 0 : i32
    %c0_i32_0 = arith.constant 0 : i32
    %c0_i32_1 = arith.constant 0 : i32
    return %arg0, %c0_i32, %c0_i32_0 : i32, i32, i32
  }
  func.func @transform_1(%arg0: i32) -> (i32, i32) {
    %c0_i32 = arith.constant 0 : i32
    %c0_i32_0 = arith.constant 0 : i32
    %c0_i32_1 = arith.constant 0 : i32
    return %c0_i32, %c0_i32_0 : i32, i32
  }
  func.func @transform_2(%arg0: i32) -> (i32, i32) {
    %c0_i32 = arith.constant 0 : i32
    %c0_i32_0 = arith.constant 0 : i32
    %c0_i32_1 = arith.constant 0 : i32
    return %c0_i32, %c0_i32_0 : i32, i32
  }
  func.func @transform_3(%arg0: i32) -> (i32, i32) {
    %c0_i32 = arith.constant 0 : i32
    %c0_i32_0 = arith.constant 0 : i32
    %c0_i32_1 = arith.constant 0 : i32
    return %c0_i32, %c0_i32_0 : i32, i32
  }
  func.func @transform_4(%arg0: i32) -> (i32, i32) {
    %c0_i32 = arith.constant 0 : i32
    %c0_i32_0 = arith.constant 0 : i32
    %c0_i32_1 = arith.constant 0 : i32
    return %c0_i32, %c0_i32_0 : i32, i32
  }
  func.func @transform_5(%arg0: i32) -> (i32, i32) {
    %c0_i32 = arith.constant 0 : i32
    %c0_i32_0 = arith.constant 0 : i32
    %c0_i32_1 = arith.constant 0 : i32
    return %c0_i32, %c0_i32_0 : i32, i32
  }
  func.func @transform_6(%arg0: i32) -> (i32, i32) {
    %c0_i32 = arith.constant 0 : i32
    %c0_i32_0 = arith.constant 0 : i32
    %c0_i32_1 = arith.constant 0 : i32
    return %c0_i32, %c0_i32_0 : i32, i32
  }
  func.func @transform_7(%arg0: i32) -> (i32, i32) {
    %c0_i32 = arith.constant 0 : i32
    %c0_i32_0 = arith.constant 0 : i32
    return %arg0, %c0_i32 : i32, i32
  }
}

</mosaic_0001>

<bundles_post_ra>
// kernel: bert_last_four_mean_max_head.1
= control target key start
LH: loop header
LB: loop body
LE: loop exit
PB: predicated region body
PF: predicated region fallthrough
CT: control target
= control target key end

     0   :  { %12 = vsyncpa [#allocation3], 0  ;;  %s2925_s0 = inlined_call_operand.vmem [shape: f32[8,8,128], index: 0, kind: input, shape index: {}]   ;;  %s2926_s1 = inlined_call_operand.hbm [shape: bf16[256,1024], index: 1, kind: input, shape index: {}]   ;;  %s2927_s2 = inlined_call_operand.vmem [shape: f32[1,1024], index: 2, kind: input, shape index: {}]   ;;  %s2928_s3 = inlined_call_operand.vmem [shape: f32[1,1024], index: 3, kind: input, shape index: {}]   ;;  %s2929_s4 = inlined_call_operand.vmem [shape: f32[1,1024], index: 4, kind: input, shape index: {}]   ;;  %s2930_s5 = inlined_call_operand.hbm [shape: bf16[1024,128], index: 5, kind: input, shape index: {}]   ;;  %s2931_s6 = inlined_call_operand.vmem [shape: f32[1,128], index: 6, kind: input, shape index: {}]   ;;  %s2932_s7 = inlined_call_operand.vmem [shape: f32[8,128], index: 7, kind: output, shape index: {}]  }
   0x1   :  { %13 = vsyncpa [#allocation5], 0  ;;  %s2429_s24 = smov [#allocation2]  }
   0x2   :  { %s21_s25 = sshll.u32 %s2429_s24, 4  ;;  %s22_s25 = int_to_ptr.vmem [resolvable:$true] %s21_s25 }
   0x3   :  { %s2393_s26 = scalar_lea.vmem %s22_s25, 16384  ;;  %p2398_p1 = scmp.lt.s32.totalorder %s22_s25, %s22_s25 }
   0x4   :  { %p2394_p0 = scmp.ne.s32.totalorder %s22_s25, %s2393_s26  ;;  %p2399_p2 = scmp.lt.s32.totalorder %s2393_s26, %s2393_s26 }
   0x6   :  { %p2400_p3 = por %p2399_p2, %p2398_p1 }
   0x8   :  { %p2401_p4 = pnand %p2400_p3, %p2394_p0 }
   0xa   :  { %2404 = shalt.err (!%p2401_p4)
}
   0xb   :  { %s2430_s27 = smov 512   ;;  %s2431_s28 = smov 32  }
   0xc   :  { %27 = dma.hbm_to_vmem [thread:$0]  %s2926_s1, 16384, %s22_s25, [#allocation3], %s2430_s27, %s2430_s27, %s2431_s28  }
   0xd   :  { %s2432_s8 = smov [#allocation4]  }
   0xe   :  { %s39_s9 = sshll.u32 %s2432_s8, 4  ;;  %s40_s9 = int_to_ptr.vmem [resolvable:$true] %s39_s9 }
   0xf   :  { %s2413_s10 = scalar_lea.vmem %s40_s9, 8192  ;;  %p2418_p6 = scmp.lt.s32.totalorder %s40_s9, %s40_s9 }
  0x10   :  { %p2414_p5 = scmp.ne.s32.totalorder %s40_s9, %s2413_s10  ;;  %p2419_p7 = scmp.lt.s32.totalorder %s2413_s10, %s2413_s10 }
  0x12   :  { %p2420_p8 = por %p2419_p7, %p2418_p6 }
  0x14   :  { %p2421_p9 = pnand %p2420_p8, %p2414_p5 }
  0x16   :  { %2424 = shalt.err (!%p2421_p9)
}
  0x17   :  { %s2433_s11 = smov 64   ;;  %s2434_s12 = smov 4  }
  0x18   :  { %45 = dma.hbm_to_vmem [thread:$0]  %s2930_s5, 8192, %s40_s9, [#allocation5], %s2433_s11, %s2433_s11, %s2434_s12  }
  0x19   :  { %2425 = dma.done.wait [#allocation3], 16384  }
  0x1a   :  { %2426 = vsyncadd [#allocation3], 4294950912 }
  0x1b   :  { %2427 = dma.done.wait [#allocation5], 8192  }
  0x1c   :  { %2428 = vsyncadd [#allocation5], 4294959104  ;;  %v265_v0 = vld [vmem:[#allocation2 + $0x1c0] sm:$0xff]  ;;  %v266_v2 = vld [vmem:[#allocation2 + $0x1c8] sm:$0xff]  ;;  %vm176_vm0 = vcmask 1041409   ;;  %vm178_vm1 = vcmask 1042434  }
  0x1d   :  { %v269_v1 = vld [vmem:[#allocation2 + $0x1e0] sm:$0xff]  ;;  %v270_v4 = vld [vmem:[#allocation2 + $0x1e8] sm:$0xff]  ;;  %vm180_vm2 = vcmask 1043459   ;;  %vm182_vm3 = vcmask 1044484   ;;  %vm184_vm4 = vcmask 1045509   ;;  %vm186_vm5 = vcmask 1046534  }
  0x1e   :  { %v2089_v3 = vcombine.high %v265_v0, %v269_v1  ;;  %v2088_v5 = vcombine.low %v265_v0, %v269_v1  ;;  %v257_v6 = vld [vmem:[#allocation2 + $0x180] sm:$0xff]  ;;  %v2091_v8 = vcombine.high %v266_v2, %v270_v4  ;;  %v2090_v9 = vcombine.low %v266_v2, %v270_v4  ;;  %v258_v11 = vld [vmem:[#allocation2 + $0x188] sm:$0xff] }
  0x1f   :  { %v261_v7 = vld [vmem:[#allocation2 + $0x1a0] sm:$0xff]  ;;  %v262_v12 = vld [vmem:[#allocation2 + $0x1a8] sm:$0xff]  ;;  %vm188_vm6 = vcmask 1047559  }
  0x20   :  { %v2081_v10 = vcombine.high %v257_v6, %v261_v7  ;;  %v249_v13 = vld [vmem:[#allocation2 + $0x140] sm:$0xff]  ;;  %1019 = vmatprep.subr.bf16.mxu0 %v2089_v3  ;;  %v2083_v14 = vcombine.high %v258_v11, %v262_v12  ;;  %v250_v16 = vld [vmem:[#allocation2 + $0x148] sm:$0xff]  ;;  %1060 = vmatprep.subr.bf16.mxu1 %v2091_v8  ;;  %v2080_v18 = vcombine.low %v257_v6, %v261_v7 }
  0x21   :  { %v253_v15 = vld [vmem:[#allocation2 + $0x160] sm:$0xff]  ;;  %v254_v17 = vld [vmem:[#allocation2 + $0x168] sm:$0xff]  ;;  %1020 = vmatpush1.bf16.msra.mxu0 %v2088_v5  ;;  %1061 = vmatpush1.bf16.msra.mxu1 %v2090_v9  ;;  %v2082_v19 = vcombine.low %v258_v11, %v262_v12 }
  0x22   :  { %1021 = vmatprep.subr.bf16.mxu0 %v2081_v10  ;;  %v2073_v20 = vcombine.high %v249_v13, %v253_v15  ;;  %1062 = vmatprep.subr.bf16.mxu1 %v2083_v14  ;;  %v2075_v21 = vcombine.high %v250_v16, %v254_v17  ;;  %v241_v22 = vld [vmem:[#allocation2 + $0x100] sm:$0xff]  ;;  %v242_v24 = vld [vmem:[#allocation2 + $0x108] sm:$0xff]  ;;  %v2072_v26 = vcombine.low %v249_v13, %v253_v15 }
  0x23   :  { %v245_v23 = vld [vmem:[#allocation2 + $0x120] sm:$0xff]  ;;  %v246_v25 = vld [vmem:[#allocation2 + $0x128] sm:$0xff]  ;;  %v2074_v27 = vcombine.low %v250_v16, %v254_v17 }
  0x24   :  { %v2065_v28 = vcombine.high %v241_v22, %v245_v23  ;;  %v2481_v29 = vld [vmem:[#allocation2 + $0xc0] sm:$0xff]  ;;  %v2485_v31 = vld [vmem:[#allocation2 + $0xc8] sm:$0xff]  ;;  %v2067_v32 = vcombine.high %v242_v24, %v246_v25  ;;  %v2064_v39 = vcombine.low %v241_v22, %v245_v23  ;;  %v2066_v43 = vcombine.low %v242_v24, %v246_v25 }
  0x25   :  { %1022 = vmatpush1.bf16.msra.mxu0 %v2080_v18  ;;  %1063 = vmatpush1.bf16.msra.mxu1 %v2082_v19  ;;  %v2483_v30 = vld [vmem:[#allocation2 + $0xe0] sm:$0xff]  ;;  %v2487_v33 = vld [vmem:[#allocation2 + $0xe8] sm:$0xff] }
  0x26   :  { %1023 = vmatprep.subr.bf16.mxu0 %v2073_v20  ;;  %1064 = vmatprep.subr.bf16.mxu1 %v2075_v21  ;;  %v2489_v34 = vld [vmem:[#allocation2 + $0x80] sm:$0xff]  ;;  %v2493_v36 = vld [vmem:[#allocation2 + $0x88] sm:$0xff]  ;;  %v2057_v44 = vcombine.high %v2481_v29, %v2483_v30  ;;  %v2059_v48 = vcombine.high %v2485_v31, %v2487_v33  ;;  %v2056_v49 = vcombine.low %v2481_v29, %v2483_v30 }
  0x27   :  { %v2491_v35 = vld [vmem:[#allocation2 + $0xa0] sm:$0xff]  ;;  %v2495_v37 = vld [vmem:[#allocation2 + $0xa8] sm:$0xff]  ;;  %v2058_v53 = vcombine.low %v2485_v31, %v2487_v33  ;;  %v2620_v33 = vld [vmem:[%s2925_s0 + $0x10] sm:$0xff] }
  0x28   :  { %v2497_v38 = vld [vmem:[#allocation2 + $0x40] sm:$0xff]  ;;  %v2501_v41 = vld [vmem:[#allocation2 + $0x48] sm:$0xff]  ;;  %v2049_v54 = vcombine.high %v2489_v34, %v2491_v35  ;;  %v2051_v55 = vcombine.high %v2493_v36, %v2495_v37  ;;  %v2048_v56 = vcombine.low %v2489_v34, %v2491_v35  ;;  %v2050_v60 = vcombine.low %v2493_v36, %v2495_v37  ;;  %v2625_v34 = vld [vmem:[%s2925_s0 + $0x18] sm:$0xff] }
  0x29   :  { %1024 = vmatpush1.bf16.msra.mxu0 %v2072_v26  ;;  %v2499_v40 = vld [vmem:[#allocation2 + $0x60] sm:$0xff]  ;;  %v2503_v42 = vld [vmem:[#allocation2 + $0x68] sm:$0xff]  ;;  %1065 = vmatpush1.bf16.msra.mxu1 %v2074_v27 }
  0x2a   :  { %1025 = vmatprep.subr.bf16.mxu0 %v2065_v28  ;;  %v2507_v45 = vld [vmem:[#allocation2] sm:$0xff]  ;;  %v2511_v47 = vld [vmem:[#allocation2 + $0x8] sm:$0xff]  ;;  %1066 = vmatprep.subr.bf16.mxu1 %v2067_v32  ;;  %v2041_v61 = vcombine.high %v2497_v38, %v2499_v40  ;;  %v2043_v62 = vcombine.high %v2501_v41, %v2503_v42  ;;  %v2040_v63 = vcombine.low %v2497_v38, %v2499_v40 }
  0x2b   :  { %v2509_v46 = vld [vmem:[#allocation2 + $0x20] sm:$0xff]  ;;  %v2517_v50 = vld [vmem:[#allocation2 + $0x28] sm:$0xff]  ;;  %v2042_v3 = vcombine.low %v2501_v41, %v2503_v42 }
  0x2c   :  { %v2519_v51 = vld [vmem:[#allocation2 + $0x3c0] sm:$0xff]  ;;  %v2531_v57 = vld [vmem:[#allocation2 + $0x3c8] sm:$0xff]  ;;  %v2033_v4 = vcombine.high %v2507_v45, %v2509_v46  ;;  %v2032_v5 = vcombine.low %v2507_v45, %v2509_v46  ;;  %v2035_v9 = vcombine.high %v2511_v47, %v2517_v50  ;;  %v2034_v10 = vcombine.low %v2511_v47, %v2517_v50 }
  0x2d   :  { %v2521_v52 = vld [vmem:[#allocation2 + $0x3e0] sm:$0xff]  ;;  %v2533_v58 = vld [vmem:[#allocation2 + $0x3e8] sm:$0xff]  ;;  %1026 = vmatpush1.bf16.msra.mxu0 %v2064_v39  ;;  %1067 = vmatpush1.bf16.msra.mxu1 %v2066_v43 }
  0x2e   :  { %v2535_v59 = vld [vmem:[#allocation2 + $0x380] sm:$0xff]  ;;  %v2547_v1 = vld [vmem:[#allocation2 + $0x388] sm:$0xff]  ;;  %1027 = vmatprep.subr.bf16.mxu0 %v2057_v44  ;;  %1068 = vmatprep.subr.bf16.mxu1 %v2059_v48  ;;  %v2153_v11 = vcombine.high %v2519_v51, %v2521_v52  ;;  %v2155_v12 = vcombine.high %v2531_v57, %v2533_v58  ;;  %v2152_v16 = vcombine.low %v2519_v51, %v2521_v52  ;;  %v2644_v44 = vld [vmem:[%s2925_s0 + $0x30] sm:$0xff] }
  0x2f   :  { %v2545_v0 = vld [vmem:[#allocation2 + $0x3a0] sm:$0xff]  ;;  %v2549_v2 = vld [vmem:[#allocation2 + $0x3a8] sm:$0xff]  ;;  %v2649_v48 = vld [vmem:[%s2925_s0 + $0x38] sm:$0xff]  ;;  %v2934_v39 = vrot.slane %v2644_v44, 4 }
  0x30   :  { %v2557_v6 = vld [vmem:[#allocation2 + $0x340] sm:$0xff]  ;;  %v2561_v8 = vld [vmem:[#allocation2 + $0x348] sm:$0xff]  ;;  %v2935_v32 = vrot.slane %v2649_v48, 4 }
  0x31   :  { %v2559_v7 = vld [vmem:[#allocation2 + $0x360] sm:$0xff]  ;;  %v2571_v13 = vld [vmem:[#allocation2 + $0x368] sm:$0xff]  ;;  %1028 = vmatpush1.bf16.msra.mxu0 %v2056_v49  ;;  %1069 = vmatpush1.bf16.msra.mxu1 %v2058_v53  ;;  %v75_v49 = vrot.slane %v2620_v33, 4  ;;  %v2937_v53 = vrot.slane %v2625_v34, 4  ;;  %v157_v26 = vmax.f32 %v2644_v44, %v2934_v39 }
  0x32   :  { %v2573_v14 = vld [vmem:[#allocation2 + $0x300] sm:$0xff]  ;;  %v2585_v20 = vld [vmem:[#allocation2 + $0x308] sm:$0xff]  ;;  %1029 = vmatprep.subr.bf16.mxu0 %v2049_v54  ;;  %1070 = vmatprep.subr.bf16.mxu1 %v2051_v55 }
  0x33   :  { %v2575_v15 = vld [vmem:[#allocation2 + $0x320] sm:$0xff]  ;;  %v2587_v21 = vld [vmem:[#allocation2 + $0x328] sm:$0xff]  ;;  %v139_v27 = vmax.f32 %v2625_v34, %v2937_v53  ;;  %v158_v17 = vrot.slane %v157_v26, 2 }
  0x34   :  { %v2606_v29 = vld [vmem:[%s2925_s0] sm:$0xff]  ;;  %v2611_v30 = vld [vmem:[%s2925_s0 + $0x8] sm:$0xff] }
  0x35   :  { %v2630_v35 = vld [vmem:[%s2925_s0 + $0x20] sm:$0xff]  ;;  %v63_v36 = vrot.slane %v2606_v29, 4  ;;  %v69_v37 = vrot.slane %v2611_v30, 4  ;;  %v2639_v43 = vld [vmem:[%s2925_s0 + $0x28] sm:$0xff]  ;;  %1030 = vmatpush1.bf16.msra.mxu0 %v2048_v56  ;;  %1071 = vmatpush1.bf16.msra.mxu1 %v2050_v60  ;;  %v133_v56 = vmax.f32 %v2620_v33, %v75_v49  ;;  %v140_v19 = vrot.slane %v139_v27, 2 }
  0x36   :  { %v2936_v54 = vrot.slane %v2630_v35, 4  ;;  %v2933_v55 = vrot.slane %v2639_v43, 4  ;;  %1031 = vmatprep.subr.bf16.mxu0 %v2041_v61  ;;  %1072 = vmatprep.subr.bf16.mxu1 %v2043_v62  ;;  %v163_v62 = vmax.f32 %v2649_v48, %v2935_v32 }
  0x37   :  { %v121_v31 = vmax.f32 %v2606_v29, %v63_v36  ;;  %v127_v28 = vmax.f32 %v2611_v30, %v69_v37  ;;  %v134_v23 = vrot.slane %v133_v56, 2  ;;  %v64_v47 = vadd.f32 %v63_v36, %v2606_v29 }
  0x38   :  { %v145_v60 = vmax.f32 %v2630_v35, %v2936_v54  ;;  %v151_v61 = vmax.f32 %v2639_v43, %v2933_v55  ;;  %v141_v54 = vmax.f32 %v139_v27, %v140_v19  ;;  %v164_v53 = vrot.slane %v163_v62, 2 }
  0x39   :  { %v122_v25 = vrot.slane %v121_v31, 2  ;;  %v128_v24 = vrot.slane %v127_v28, 2  ;;  %1032 = vmatpush1.bf16.msra.mxu0 %v2040_v63  ;;  %1073 = vmatpush1.bf16.msra.mxu1 %v2042_v3  ;;  %v135_v32 = vmax.f32 %v133_v56, %v134_v23  ;;  %v65_v27 = vrot.slane %v64_v47, 2 }
  0x3a   :  { %v146_v18 = vrot.slane %v145_v60, 2  ;;  %v152_v55 = vrot.slane %v151_v61, 2  ;;  %1033 = vmatprep.subr.bf16.mxu0 %v2033_v4  ;;  %1074 = vmatprep.subr.bf16.mxu1 %v2035_v9  ;;  %v142_v3 = vrot.slane %v141_v54, 1 }
  0x3b   :  { %v123_v22 = vmax.f32 %v121_v31, %v122_v25  ;;  %v129_v39 = vmax.f32 %v127_v28, %v128_v24  ;;  %v159_v25 = vmax.f32 %v157_v26, %v158_v17  ;;  %v136_v42 = vrot.slane %v135_v32, 1 }
  0x3c   :  { %v147_v40 = vmax.f32 %v145_v60, %v146_v18  ;;  %v153_v63 = vmax.f32 %v151_v61, %v152_v55  ;;  %v165_v31 = vmax.f32 %v163_v62, %v164_v53  ;;  %v143_v18 = vmax.f32 %v141_v54, %v142_v3 }
  0x3d   :  { %v124_v38 = vrot.slane %v123_v22, 1  ;;  %v130_v41 = vrot.slane %v129_v39, 1  ;;  %1034 = vmatpush1.bf16.msra.mxu0 %v2032_v5  ;;  %v160_v24 = vrot.slane %v159_v25, 1  ;;  %1075 = vmatpush1.bf16.msra.mxu1 %v2034_v10  ;;  %v137_v17 = vmax.f32 %v135_v32, %v136_v42 }
  0x3e   :  { %v148_v19 = vrot.slane %v147_v40, 1  ;;  %v154_v23 = vrot.slane %v153_v63, 1  ;;  %1035 = vmatprep.subr.bf16.mxu0 %v2153_v11  ;;  %v166_v26 = vrot.slane %v165_v31, 1  ;;  %1076 = vmatprep.subr.bf16.mxu1 %v2155_v12  ;;  %v70_v11 = vadd.f32 %v69_v37, %v2611_v30 }
  0x3f   :  { %v125_v4 = vmax.f32 %v123_v22, %v124_v38  ;;  %v131_v9 = vmax.f32 %v129_v39, %v130_v41  ;;  %v161_v5 = vmax.f32 %v159_v25, %v160_v24  ;;  %v76_v22 = vadd.f32 %v75_v49, %v2620_v33  ;;  %v302_v24 = vld [vmem:[#allocation2 + $0x2e8] sm:$0xff] }
  0x40   :  { %v149_v45 = vmax.f32 %v147_v40, %v148_v19  ;;  %v155_v46 = vmax.f32 %v153_v63, %v154_v23  ;;  %v167_v50 = vmax.f32 %v165_v31, %v166_v26  ;;  %v2938_v28 = vrot.slane %v2625_v34, 4  ;;  %v301_v31 = vld [vmem:[#allocation2 + $0x2e0] sm:$0xff]  ;;  %v298_v23 = vld [vmem:[#allocation2 + $0x2c8] sm:$0xff] }
  0x41   :  { %v199_v10 = vsel %vm176_vm0, %v131_v9, %v125_v4  ;;  %1036 = vmatpush2.bf16.msra.mxu0 %v2152_v16  ;;  %v2939_v32 = vrot.slane %v2630_v35, 4  ;;  %v2940_v30 = vcombine.low %v2531_v57, %v2533_v58  ;;  %v2941_v33 = vcombine.high %v2535_v59, %v2545_v0 }
  0x42   :  { %v200_v12 = vsel %vm178_vm1, %v137_v17, %v199_v10  ;;  %v82_v29 = vadd.f32 %v2938_v28, %v2625_v34  ;;  %v71_v52 = vrot.slane %v70_v11, 2  ;;  %v77_v16 = vrot.slane %v76_v22, 2 }
  0x43   :  { %v88_v36 = vadd.f32 %v2939_v32, %v2630_v35  ;;  %1077 = vmatpush2.bf16.msra.mxu1 %v2940_v30  ;;  %1037 = vmatprep.subr.bf16.mxu0 %v2941_v33  ;;  %v201_v51 = vsel %vm180_vm2, %v143_v18, %v200_v12  ;;  %v2942_v37 = vrot.slane %v2639_v43, 4  ;;  %v2943_v39 = vcombine.high %v2547_v1, %v2549_v2  ;;  %v294_v33 = vld [vmem:[#allocation2 + $0x2a8] sm:$0xff] }
  0x44   :  { %v202_v35 = vsel %vm182_vm3, %v149_v45, %v201_v51  ;;  %v66_v57 = vadd.f32 %v65_v27, %v64_v47  ;;  %v83_v58 = vrot.slane %v82_v29, 2  ;;  %v72_v54 = vadd.f32 %v71_v52, %v70_v11 }
  0x45   :  { %v94_v34 = vadd.f32 %v2942_v37, %v2639_v43  ;;  %1078 = vmatprep.subr.bf16.mxu1 %v2943_v39  ;;  %v89_v49 = vrot.slane %v88_v36, 2  ;;  %v203_v53 = vsel %vm184_vm4, %v155_v46, %v202_v35  ;;  %v78_v55 = vadd.f32 %v77_v16, %v76_v22  ;;  %v281_v39 = vld [vmem:[#allocation2 + $0x240] sm:$0xff] }
  0x46   :  { %v2944_v60 = vcombine.low %v2535_v59, %v2545_v0  ;;  %v204_v43 = vsel %vm186_vm5, %v161_v5, %v203_v53  ;;  %v67_v61 = vrot.slane %v66_v57, 1  ;;  %v84_v62 = vadd.f32 %v83_v58, %v82_v29  ;;  %v297_v0 = vld [vmem:[#allocation2 + $0x2c0] sm:$0xff] }
  0x47   :  { %v95_v56 = vrot.slane %v94_v34, 2  ;;  %v90_v38 = vadd.f32 %v89_v49, %v88_v36  ;;  %v2945_v40 = vcombine.low %v2547_v1, %v2549_v2  ;;  %v2946_v63 = vcombine.high %v2557_v6, %v2559_v7  ;;  %v290_v36 = vld [vmem:[#allocation2 + $0x288] sm:$0xff]  ;;  %v285_v35 = vld [vmem:[#allocation2 + $0x260] sm:$0xff] }
  0x48   :  { %1038 = vmatpush2.bf16.msra.mxu0 %v2944_v60  ;;  %v205_v25 = vsel %vm188_vm6, %v167_v50, %v204_v43  ;;  %v73_v41 = vrot.slane %v72_v54, 1  ;;  %v79_v42 = vrot.slane %v78_v55, 1  ;;  %v2947_v59 = vcombine.high %v2561_v8, %v2571_v13 }
  0x49   :  { %1079 = vmatpush2.bf16.msra.mxu1 %v2945_v40  ;;  %1039 = vmatprep.subr.bf16.mxu0 %v2946_v63  ;;  %v96_v3 = vadd.f32 %v95_v56, %v94_v34  ;;  %v2757_v4 = vpack.c.bf16 %v205_v25, %v205_v25  ;;  %v68_v19 = vadd.f32 %v67_v61, %v66_v57  ;;  %v85_v1 = vrot.slane %v84_v62, 1  ;;  %v286_v56 = vld [vmem:[#allocation2 + $0x268] sm:$0xff]  ;;  %v273_v63 = vld [vmem:[#allocation2 + $0x200] sm:$0xff] }
  0x4a   :  { %1080 = vmatprep.subr.bf16.mxu1 %v2947_v59  ;;  %v91_v2 = vrot.slane %v90_v38, 1  ;;  %v74_v9 = vadd.f32 %v73_v41, %v72_v54  ;;  %v80_v17 = vadd.f32 %v79_v42, %v78_v55  ;;  %v2948_v26 = vrot.slane %v2644_v44, 4  ;;  %v282_v55 = vld [vmem:[#allocation2 + $0x248] sm:$0xff] }
  0x4b   :  { %v97_v18 = vrot.slane %v96_v3, 1  ;;  %v2949_v46 = vcombine.low %v2557_v6, %v2559_v7  ;;  %1051 = vmatprep.mubr.bf16.mxu0 %v2757_v4  ;;  %v86_v5 = vadd.f32 %v85_v1, %v84_v62  ;;  %v2950_v50 = vrot.slane %v2649_v48, 4  ;;  %v289_v6 = vld [vmem:[#allocation2 + $0x280] sm:$0xff]  ;;  %1092 = vmatprep.mubr.bf16.mxu1 %v2757_v4  ;;  %v274_v42 = vld [vmem:[#allocation2 + $0x208] sm:$0xff] }
  0x4c   :  { %v100_v45 = vadd.f32 %v2948_v26, %v2644_v44  ;;  %v92_v47 = vadd.f32 %v91_v2, %v90_v38  ;;  %v112_v11 = vmul.f32 0.125, %v68_v19  ;;  %v2951_v22 = vcombine.low %v2561_v8, %v2571_v13  ;;  %v267_v2 = vld [vmem:[#allocation2 + $0x1d0] sm:$0xff]  ;;  %v272_v26 = vld [vmem:[#allocation2 + $0x1f8] sm:$0xff] }
  0x4d   :  { %1040 = vmatpush2.bf16.msra.mxu0 %v2949_v46  ;;  %v106_v10 = vadd.f32 %v2950_v50, %v2649_v48  ;;  %v2952_v44 = vcombine.high %v2573_v14, %v2575_v15  ;;  %v2121_v12 = vcombine.high %v297_v0, %v301_v31  ;;  %v113_v27 = vmul.f32 0.125, %v74_v9  ;;  %v293_v48 = vld [vmem:[#allocation2 + $0x2a0] sm:$0xff]  ;;  %v263_v50 = vld [vmem:[#allocation2 + $0x1b0] sm:$0xff] }
  0x4e   :  { %1081 = vmatpush2.bf16.msra.mxu1 %v2951_v22  ;;  %v101_v7 = vrot.slane %v100_v45, 2  ;;  %v114_v28 = vmul.f32 0.125, %v80_v17  ;;  %v2953_v29 = vcombine.high %v2585_v20, %v2587_v21  ;;  %v2123_v32 = vcombine.high %v298_v23, %v302_v24  ;;  %v260_v22 = vld [vmem:[#allocation2 + $0x198] sm:$0xff] }
  0x4f   :  { %1041 = vmatprep.subr.bf16.mxu0 %v2952_v44  ;;  %v98_v8 = vadd.f32 %v97_v18, %v96_v3  ;;  %v107_v13 = vrot.slane %v106_v10, 2  ;;  %v115_v30 = vmul.f32 0.125, %v86_v5  ;;  %v116_v52 = vmul.f32 0.125, %v92_v47  ;;  %v268_v18 = vld [vmem:[#allocation2 + $0x1d8] sm:$0xff]  ;;  %v259_v47 = vld [vmem:[#allocation2 + $0x190] sm:$0xff] }
  0x50   :  { %1082 = vmatprep.subr.bf16.mxu1 %v2953_v29  ;;  %v102_v51 = vadd.f32 %v101_v7, %v100_v45  ;;  %v177_v16 = vsel %vm176_vm0, %v113_v27, %v112_v11  ;;  %v2954_v37 = vcombine.low %v2573_v14, %v2575_v15  ;;  %v2120_v34 = vcombine.low %v297_v0, %v301_v31  ;;  %v278_v0 = vld [vmem:[#allocation2 + $0x228] sm:$0xff]  ;;  %v264_v44 = vld [vmem:[#allocation2 + $0x1b8] sm:$0xff]  ;;  %v251_v27 = vld [vmem:[#allocation2 + $0x150] sm:$0xff] }
  0x51   :  { %v108_v57 = vadd.f32 %v107_v13, %v106_v10  ;;  %v179_v58 = vsel %vm178_vm1, %v114_v28, %v177_v16  ;;  %v2955_v49 = vcombine.low %v2585_v20, %v2587_v21  ;;  %v2122_v53 = vcombine.low %v298_v23, %v302_v24  ;;  %v277_v20 = vld [vmem:[#allocation2 + $0x220] sm:$0xff]  ;;  %v271_v23 = vld [vmem:[#allocation2 + $0x1f0] sm:$0xff]  ;;  %v244_v16 = vld [vmem:[#allocation2 + $0x118] sm:$0xff] }
  0x52   :  { %1042 = vmatpush2.bf16.msra.mxu0 %v2954_v37  ;;  %v2113_v54 = vcombine.high %v289_v6, %v293_v48  ;;  %v103_v60 = vrot.slane %v102_v51, 1  ;;  %v181_v43 = vsel %vm180_vm2, %v115_v30, %v179_v58  ;;  %v2115_v14 = vcombine.high %v290_v36, %v294_v33  ;;  %v255_v28 = vld [vmem:[#allocation2 + $0x170] sm:$0xff]  ;;  %v248_v37 = vld [vmem:[#allocation2 + $0x138] sm:$0xff] }
  0x53   :  { %1083 = vmatpush2.bf16.msra.mxu1 %v2955_v49  ;;  %1043 = vmatprep.subr.bf16.mxu0 %v2121_v12  ;;  %v109_v15 = vrot.slane %v108_v57, 1  ;;  %v117_v61 = vmul.f32 0.125, %v98_v8  ;;  %v183_v38 = vsel %vm182_vm3, %v116_v52, %v181_v43  ;;  %v2112_v40 = vcombine.low %v289_v6, %v293_v48  ;;  %v252_v48 = vld [vmem:[#allocation2 + $0x158] sm:$0xff]  ;;  %v243_v30 = vld [vmem:[#allocation2 + $0x110] sm:$0xff] }
  0x54   :  { %1084 = vmatprep.subr.bf16.mxu1 %v2123_v32  ;;  %v104_v62 = vadd.f32 %v103_v60, %v102_v51  ;;  %v2114_v25 = vcombine.low %v290_v36, %v294_v33  ;;  %v2105_v41 = vcombine.high %v281_v39, %v285_v35  ;;  %v2107_v59 = vcombine.high %v282_v55, %v286_v56  ;;  %v256_v36 = vld [vmem:[#allocation2 + $0x178] sm:$0xff]  ;;  %v247_v33 = vld [vmem:[#allocation2 + $0x130] sm:$0xff] }
  0x55   :  { %v110_v21 = vadd.f32 %v109_v15, %v108_v57  ;;  %v185_v19 = vsel %vm184_vm4, %v117_v61, %v183_v38  ;;  %v2104_v1 = vcombine.low %v281_v39, %v285_v35  ;;  %v2106_v24 = vcombine.low %v282_v55, %v286_v56  ;;  %v235_v35 = vld [vmem:[#allocation2 + $0xd0] sm:$0xff]  ;;  %v228_v15 = vld [vmem:[#allocation2 + $0x98] sm:$0xff] }
  0x56   :  { %1044 = vmatpush2.bf16.msra.mxu0 %v2120_v34  ;;  %v118_v3 = vmul.f32 0.125, %v104_v62  ;;  %v2097_v9 = vcombine.high %v273_v63, %v277_v20  ;;  %v2099_v45 = vcombine.high %v274_v42, %v278_v0  ;;  %v2096_v46 = vcombine.low %v273_v63, %v277_v20  ;;  %v239_v57 = vld [vmem:[#allocation2 + $0xf0] sm:$0xff]  ;;  %v232_v61 = vld [vmem:[#allocation2 + $0xb8] sm:$0xff] }
  0x57   :  { %1085 = vmatpush2.bf16.msra.mxu1 %v2122_v53  ;;  %1045 = vmatprep.subr.bf16.mxu0 %v2113_v54  ;;  %v119_v31 = vmul.f32 0.125, %v110_v21  ;;  %v2098_v10 = vcombine.low %v274_v42, %v278_v0  ;;  %v2093_v11 = vcombine.high %v267_v2, %v271_v23  ;;  %v2095_v12 = vcombine.high %v268_v18, %v272_v26  ;;  %v236_v53 = vld [vmem:[#allocation2 + $0xd8] sm:$0xff]  ;;  %v227_v60 = vld [vmem:[#allocation2 + $0x90] sm:$0xff] }
  0x58   :  { %1086 = vmatprep.subr.bf16.mxu1 %v2115_v14  ;;  %v187_v17 = vsel %vm186_vm5, %v118_v3, %v185_v19  ;;  %v2092_v7 = vcombine.low %v267_v2, %v271_v23  ;;  %v2094_v29 = vcombine.low %v268_v18, %v272_v26  ;;  %v2085_v32 = vcombine.high %v259_v47, %v263_v50  ;;  %v240_v54 = vld [vmem:[#allocation2 + $0xf8] sm:$0xff]  ;;  %v231_v43 = vld [vmem:[#allocation2 + $0xb0] sm:$0xff] }
  0x59   :  { %v189_v5 = vsel %vm188_vm6, %v119_v31, %v187_v17  ;;  %v2087_v8 = vcombine.high %v260_v22, %v264_v44  ;;  %v2084_v13 = vcombine.low %v259_v47, %v263_v50  ;;  %v2086_v51 = vcombine.low %v260_v22, %v264_v44  ;;  %v223_v63 = vld [vmem:[#allocation2 + $0x70] sm:$0xff]  ;;  %v216_v2 = vld [vmem:[#allocation2 + $0x38] sm:$0xff] }
  0x5a   :  { %1046 = vmatpush2.bf16.msra.mxu0 %v2112_v40  ;;  %v2792_v6 = vpack.c.bf16 %v189_v5, %v189_v5  ;;  %v2077_v52 = vcombine.high %v251_v27, %v255_v28  ;;  %v2079_v34 = vcombine.high %v252_v48, %v256_v36  ;;  %v2076_v39 = vcombine.low %v251_v27, %v255_v28  ;;  %v219_v40 = vld [vmem:[#allocation2 + $0x50] sm:$0xff]  ;;  %v336_v5 = vld [vmem:[#allocation2 + $0x3f8] sm:$0xff] }
  0x5b   :  { %1087 = vmatpush2.bf16.msra.mxu1 %v2114_v25  ;;  %1047 = vmatprep.subr.bf16.mxu0 %v2105_v41  ;;  %v2078_v58 = vcombine.low %v252_v48, %v256_v36  ;;  %v2069_v49 = vcombine.high %v243_v30, %v247_v33  ;;  %v2071_v55 = vcombine.high %v244_v16, %v248_v37  ;;  %v220_v25 = vld [vmem:[#allocation2 + $0x58] sm:$0xff]  ;;  %v215_v0 = vld [vmem:[#allocation2 + $0x30] sm:$0xff] }
  0x5c   :  { %1088 = vmatprep.subr.bf16.mxu1 %v2107_v59  ;;  %v2068_v56 = vcombine.low %v243_v30, %v247_v33  ;;  %v2070_v14 = vcombine.low %v244_v16, %v248_v37  ;;  %v2063_v62 = vcombine.high %v236_v53, %v240_v54  ;;  %v2060_v38 = vcombine.low %v235_v35, %v239_v57  ;;  %v224_v41 = vld [vmem:[#allocation2 + $0x78] sm:$0xff]  ;;  %v211_v59 = vld [vmem:[#allocation2 + $0x10] sm:$0xff] }
  0x5d   :  { %v2062_v20 = vcombine.low %v236_v53, %v240_v54  ;;  %v2053_v21 = vcombine.high %v227_v60, %v231_v43  ;;  %v2055_v42 = vcombine.high %v228_v15, %v232_v61  ;;  %v2052_v3 = vcombine.low %v227_v60, %v231_v43  ;;  %v335_v17 = vld [vmem:[#allocation2 + $0x3f0] sm:$0xff] }
  0x5e   :  { %1048 = vmatpush2.bf16.msra.mxu0 %v2104_v1  ;;  %v2054_v31 = vcombine.low %v228_v15, %v232_v61  ;;  %v2045_v19 = vcombine.high %v219_v40, %v223_v63  ;;  %v212_v1 = vld [vmem:[#allocation2 + $0x18] sm:$0xff]  ;;  %v2047_v23 = vcombine.high %v220_v25, %v224_v41  ;;  %v2046_v18 = vcombine.low %v220_v25, %v224_v41  ;;  %v323_v22 = vld [vmem:[#allocation2 + $0x390] sm:$0xff] }
  0x5f   :  { %1089 = vmatpush2.bf16.msra.mxu1 %v2106_v24  ;;  %1049 = vmatprep.subr.bf16.mxu0 %v2097_v9  ;;  %v2044_v24 = vcombine.low %v219_v40, %v223_v63  ;;  %v331_v9 = vld [vmem:[#allocation2 + $0x3d0] sm:$0xff]  ;;  %v2037_v26 = vcombine.high %v211_v59, %v215_v0  ;;  %v2036_v47 = vcombine.low %v211_v59, %v215_v0 }
  0x60   :  { %1090 = vmatprep.subr.bf16.mxu1 %v2099_v45  ;;  %v2039_v45 = vcombine.high %v212_v1, %v216_v2  ;;  %v2038_v50 = vcombine.low %v212_v1, %v216_v2  ;;  %v327_v44 = vld [vmem:[#allocation2 + $0x3b0] sm:$0xff]  ;;  %v2156_v27 = vcombine.low %v331_v9, %v335_v17 }
  0x61   :  { %v315_v48 = vld [vmem:[#allocation2 + $0x350] sm:$0xff]  ;;  %v2148_v30 = vcombine.low %v323_v22, %v327_v44 }
  0x62   :  { %1050 = vmatpush2.bf16.msra.mxu0 %v2096_v46  ;;  %v332_v46 = vld [vmem:[#allocation2 + $0x3d8] sm:$0xff]  ;;  %v319_v36 = vld [vmem:[#allocation2 + $0x370] sm:$0xff] }
  0x63   :  { %1091 = vmatpush2.bf16.msra.mxu1 %v2098_v10  ;;  %1101 = vmatprep.subr.bf16.mxu0 %v2093_v11  ;;  %v2157_v10 = vcombine.high %v331_v9, %v335_v17  ;;  %v2159_v11 = vcombine.high %v332_v46, %v336_v5  ;;  %v2158_v28 = vcombine.low %v332_v46, %v336_v5  ;;  %v307_v16 = vld [vmem:[#allocation2 + $0x310] sm:$0xff] }
  0x64   :  { %1142 = vmatprep.subr.bf16.mxu1 %v2095_v12  ;;  %v324_v12 = vld [vmem:[#allocation2 + $0x398] sm:$0xff]  ;;  %v311_v37 = vld [vmem:[#allocation2 + $0x330] sm:$0xff] }
  0x65   :  { %1052 = vmatmul.mubr.bf16.vlgmr.msra.gmra.mxu0 %v2792_v6  ;;  %v299_v53 = vld [vmem:[#allocation2 + $0x2d0] sm:$0xff]  ;;  %v2132_v60 = vcombine.low %v307_v16, %v311_v37 }
  0x66   :  { %1093 = vmatmul.mubr.bf16.vlgmr.msra.gmra.mxu1 %v2792_v6  ;;  %1102 = vmatpush1.bf16.msra.mxu0 %v2092_v7  ;;  %v328_v7 = vld [vmem:[#allocation2 + $0x3b8] sm:$0xff]  ;;  %v303_v54 = vld [vmem:[#allocation2 + $0x2f0] sm:$0xff] }
  0x67   :  { %1143 = vmatpush1.bf16.msra.mxu1 %v2094_v29  ;;  %1103 = vmatprep.subr.bf16.mxu0 %v2085_v32  ;;  %v2149_v29 = vcombine.high %v323_v22, %v327_v44  ;;  %v2151_v32 = vcombine.high %v324_v12, %v328_v7  ;;  %v2150_v33 = vcombine.low %v324_v12, %v328_v7  ;;  %v291_v15 = vld [vmem:[#allocation2 + $0x290] sm:$0xff]  ;;  %v339_v7 = vlaneseq }
  0x68   :  { %1144 = vmatprep.subr.bf16.mxu1 %v2087_v8  ;;  %1133 = vmatprep.mubr.bf16.mxu0 %v2757_v4  ;;  %v316_v8 = vld [vmem:[#allocation2 + $0x358] sm:$0xff]  ;;  %v295_v61 = vld [vmem:[#allocation2 + $0x2b0] sm:$0xff]  ;;  %v2124_v40 = vcombine.low %v299_v53, %v303_v54 }
  0x69   :  { %1174 = vmatprep.mubr.bf16.mxu1 %v2757_v4  ;;  %v2061_v4 = vcombine.high %v235_v35, %v239_v57  ;;  %v2140_v35 = vcombine.low %v315_v48, %v319_v36  ;;  %v283_v25 = vld [vmem:[#allocation2 + $0x250] sm:$0xff]  ;;  %v2116_v59 = vcombine.low %v291_v15, %v295_v61 }
  0x6a   :  { %1104 = vmatpush1.bf16.msra.mxu0 %v2084_v13  ;;  %v320_v13 = vld [vmem:[#allocation2 + $0x378] sm:$0xff]  ;;  %v287_v41 = vld [vmem:[#allocation2 + $0x270] sm:$0xff] }
  0x6b   :  { %1145 = vmatpush1.bf16.msra.mxu1 %v2086_v51  ;;  %1105 = vmatprep.subr.bf16.mxu0 %v2077_v52  ;;  %v2141_v51 = vcombine.high %v315_v48, %v319_v36  ;;  %v2143_v52 = vcombine.high %v316_v8, %v320_v13  ;;  %v2142_v57 = vcombine.low %v316_v8, %v320_v13  ;;  %v275_v1 = vld [vmem:[#allocation2 + $0x210] sm:$0xff] }
  0x6c   :  { %1146 = vmatprep.subr.bf16.mxu1 %v2079_v34  ;;  %v308_v34 = vld [vmem:[#allocation2 + $0x318] sm:$0xff]  ;;  %v279_v2 = vld [vmem:[#allocation2 + $0x230] sm:$0xff]  ;;  %v2108_v9 = vcombine.low %v283_v25, %v287_v41 }
  0x6e   :  { %1106 = vmatpush1.bf16.msra.mxu0 %v2076_v39  ;;  %v312_v39 = vld [vmem:[#allocation2 + $0x338] sm:$0xff] }
  0x6f   :  { %1147 = vmatpush1.bf16.msra.mxu1 %v2078_v58  ;;  %1107 = vmatprep.subr.bf16.mxu0 %v2069_v49  ;;  %v2133_v58 = vcombine.high %v307_v16, %v311_v37  ;;  %v2135_v49 = vcombine.high %v308_v34, %v312_v39  ;;  %v2134_v43 = vcombine.low %v308_v34, %v312_v39 }
  0x70   :  { %1148 = vmatprep.subr.bf16.mxu1 %v2071_v55  ;;  %v300_v55 = vld [vmem:[#allocation2 + $0x2d8] sm:$0xff] }
  0x72   :  { %1108 = vmatpush1.bf16.msra.mxu0 %v2068_v56  ;;  %v304_v56 = vld [vmem:[#allocation2 + $0x2f8] sm:$0xff] }
  0x73   :  { %1149 = vmatpush1.bf16.msra.mxu1 %v2070_v14  ;;  %1109 = vmatprep.subr.bf16.mxu0 %v2061_v4  ;;  %v2125_v14 = vcombine.high %v299_v53, %v303_v54  ;;  %v2127_v4 = vcombine.high %v300_v55, %v304_v56  ;;  %v2126_v63 = vcombine.low %v300_v55, %v304_v56 }
  0x74   :  { %1150 = vmatprep.subr.bf16.mxu1 %v2063_v62  ;;  %v292_v62 = vld [vmem:[#allocation2 + $0x298] sm:$0xff] }
  0x76   :  { %1110 = vmatpush1.bf16.msra.mxu0 %v2060_v38  ;;  %v296_v38 = vld [vmem:[#allocation2 + $0x2b8] sm:$0xff] }
  0x77   :  { %1151 = vmatpush1.bf16.msra.mxu1 %v2062_v20  ;;  %1111 = vmatprep.subr.bf16.mxu0 %v2053_v21  ;;  %v2117_v20 = vcombine.high %v291_v15, %v295_v61  ;;  %v2119_v21 = vcombine.high %v292_v62, %v296_v38  ;;  %v2118_v0 = vcombine.low %v292_v62, %v296_v38 }
  0x78   :  { %1152 = vmatprep.subr.bf16.mxu1 %v2055_v42  ;;  %v284_v42 = vld [vmem:[#allocation2 + $0x258] sm:$0xff] }
  0x7a   :  { %1112 = vmatpush1.bf16.msra.mxu0 %v2052_v3  ;;  %v288_v3 = vld [vmem:[#allocation2 + $0x278] sm:$0xff] }
  0x7b   :  { %1153 = vmatpush1.bf16.msra.mxu1 %v2054_v31  ;;  %1113 = vmatprep.subr.bf16.mxu0 %v2045_v19  ;;  %v2109_v31 = vcombine.high %v283_v25, %v287_v41  ;;  %v2111_v19 = vcombine.high %v284_v42, %v288_v3  ;;  %v2110_v17 = vcombine.low %v284_v42, %v288_v3 }
  0x7c   :  { %1154 = vmatprep.subr.bf16.mxu1 %v2047_v23  ;;  %v276_v23 = vld [vmem:[#allocation2 + $0x218] sm:$0xff] }
  0x7e   :  { %1114 = vmatpush1.bf16.msra.mxu0 %v2044_v24  ;;  %v280_v24 = vld [vmem:[#allocation2 + $0x238] sm:$0xff] }
  0x7f   :  { %1155 = vmatpush1.bf16.msra.mxu1 %v2046_v18  ;;  %1115 = vmatprep.subr.bf16.mxu0 %v2037_v26  ;;  %v2101_v18 = vcombine.high %v275_v1, %v279_v2  ;;  %v2103_v26 = vcombine.high %v276_v23, %v280_v24  ;;  %v2102_v46 = vcombine.low %v276_v23, %v280_v24 }
  0x80   :  { %1156 = vmatprep.subr.bf16.mxu1 %v2039_v45  ;;  %v2100_v45 = vcombine.low %v275_v1, %v279_v2 }
  0x82   :  { %1116 = vmatpush1.bf16.msra.mxu0 %v2036_v47 }
  0x83   :  { %1157 = vmatpush1.bf16.msra.mxu1 %v2038_v50  ;;  %1117 = vmatprep.subr.bf16.mxu0 %v2157_v10 }
  0x84   :  { %1158 = vmatprep.subr.bf16.mxu1 %v2159_v11 }
  0x86   :  { %1118 = vmatpush2.bf16.msra.mxu0 %v2156_v27  ;;  %v340_v27 = vshrl.u32 %v339_v7, 7 }
  0x87   :  { %1159 = vmatpush2.bf16.msra.mxu1 %v2158_v28  ;;  %1119 = vmatprep.subr.bf16.mxu0 %v2149_v29 }
  0x88   :  { %1160 = vmatprep.subr.bf16.mxu1 %v2151_v32  ;;  %v2800_v28 = vsub.s32 0, %v340_v27  ;;  %v2802_v29 = vsub.s32 1, %v340_v27  ;;  %v337_v32 = vld [vmem:[%s2927_s2] sm:$0xff]  ;;  %v2808_v48 = vsub.s32 2, %v340_v27  ;;  %v2815_v37 = vsub.s32 4, %v340_v27 }
  0x89   :  { %v2817_v34 = vsub.s32 6, %v340_v27  ;;  %v2819_v39 = vsub.s32 5, %v340_v27  ;;  %v2824_v54 = vsub.s32 7, %v340_v27 }
  0x8a   :  { %1120 = vmatpush2.bf16.msra.mxu0 %v2148_v30  ;;  %v346_v36 = vrot.slane %v337_v32, %v2802_v29  ;;  %v350_v13 = vrot.slane %v337_v32, %v2808_v48 }
  0x8b   :  { %1161 = vmatpush2.bf16.msra.mxu1 %v2150_v33  ;;  %1121 = vmatprep.subr.bf16.mxu0 %v2141_v51  ;;  %v2812_v33 = vsub.s32 3, %v340_v27  ;;  %v362_v53 = vrot.slane %v337_v32, %v2819_v39  ;;  %v370_v62 = vrot.slane %v337_v32, %v2824_v54 }
  0x8c   :  { %1162 = vmatprep.subr.bf16.mxu1 %v2143_v52 }
  0x8d   :  { %v354_v16 = vrot.slane %v337_v32, %v2812_v33 }
  0x8e   :  { %1122 = vmatpush2.bf16.msra.mxu0 %v2140_v35 }
  0x8f   :  { %1163 = vmatpush2.bf16.msra.mxu1 %v2142_v57  ;;  %1123 = vmatprep.subr.bf16.mxu0 %v2133_v58  ;;  %v358_v58 = vrot.slane %v337_v32, %v2815_v37 }
  0x90   :  { %1164 = vmatprep.subr.bf16.mxu1 %v2135_v49  ;;  %v366_v49 = vrot.slane %v337_v32, %v2817_v34 }
  0x92   :  { %1124 = vmatpush2.bf16.msra.mxu0 %v2132_v60 }
  0x93   :  { %1165 = vmatpush2.bf16.msra.mxu1 %v2134_v43  ;;  %1125 = vmatprep.subr.bf16.mxu0 %v2125_v14 }
  0x94   :  { %1166 = vmatprep.subr.bf16.mxu1 %v2127_v4 }
  0x96   :  { %1126 = vmatpush2.bf16.msra.mxu0 %v2124_v40 }
  0x97   :  { %1167 = vmatpush2.bf16.msra.mxu1 %v2126_v63  ;;  %1127 = vmatprep.subr.bf16.mxu0 %v2117_v20 }
  0x98   :  { %1168 = vmatprep.subr.bf16.mxu1 %v2119_v21 }
  0x9a   :  { %1128 = vmatpush2.bf16.msra.mxu0 %v2116_v59  ;;  %v2319_v59 = vld [vmem:[#allocation4 + $0x78] sm:$0xff]  }
  0x9b   :  { %1169 = vmatpush2.bf16.msra.mxu1 %v2118_v0  ;;  %1129 = vmatprep.subr.bf16.mxu0 %v2109_v31  ;;  %v2320_v0 = vld [vmem:[#allocation4 + $0xf8] sm:$0xff]  }
  0x9c   :  { %1170 = vmatprep.subr.bf16.mxu1 %v2111_v19  ;;  %v2321_v31 = vld [vmem:[#allocation4 + $0x38] sm:$0xff]  }
  0x9d   :  { %v2322_v19 = vld [vmem:[#allocation4 + $0xb8] sm:$0xff]  }
  0x9e   :  { %1130 = vmatpush2.bf16.msra.mxu0 %v2108_v9 }
  0x9f   :  { %1171 = vmatpush2.bf16.msra.mxu1 %v2110_v17  ;;  %1131 = vmatprep.subr.bf16.mxu0 %v2101_v18 }
  0xa0   :  { %1172 = vmatprep.subr.bf16.mxu1 %v2103_v26 }
  0xa2   :  { %1132 = vmatpush2.bf16.msra.mxu0 %v2100_v45 }
  0xa3   :  { %1173 = vmatpush2.bf16.msra.mxu1 %v2102_v46  ;;  %2225 = vmatprep.subr.bf16.mxu0 %v2319_v59  ;;  %v2350_v59 = vld [vmem:[#allocation4 + $0x80] sm:$0xff]  }
  0xa4   :  { %2247 = vmatprep.subr.bf16.mxu1 %v2320_v0  ;;  %v2351_v0 = vld [vmem:[#allocation4 + $0x178] sm:$0xff]  }
  0xa5   :  { %1134 = vmatmul.mubr.bf16.vlgmr.msra.gmra.mxu0 %v2792_v6 }
  0xa6   :  { %1175 = vmatmul.mubr.bf16.vlgmr.msra.gmra.mxu1 %v2792_v6  ;;  %v342_v6 = vrot.slane %v337_v32, %v2800_v28  ;;  %2226 = vmatpush3.bf16.msra.mxu0 %v2321_v31  ;;  %v2352_v31 = vld [vmem:[#allocation4 + $0x1f8] sm:$0xff]  }
  0xa7   :  { %2248 = vmatpush3.bf16.msra.mxu1 %v2322_v19 }
 0x125   :  { %v1053_v5 = vpop.f32.mrf.mxu0 }
 0x126   :  { %v1094_v47 = vpop.f32.mrf.mxu1  ;;  %v1054_v8 = vadd.f32 %v1053_v5, %v342_v6 }
 0x127   :  { %v1055_v50 = vpop.f32.mrf.mxu0  ;;  %v1095_v51 = vadd.f32 %v1094_v47, %v350_v13 }
 0x128   :  { %v1096_v10 = vpop.f32.mrf.mxu1  ;;  %v1056_v30 = vadd.f32 %v1055_v50, %v346_v36 }
 0x129   :  { %v1057_v11 = vpop.f32.mrf.mxu0  ;;  %v1097_v35 = vadd.f32 %v1096_v10, %v354_v16  ;;  %v2326_v16 = vld [vmem:[#allocation4 + $0xb0] sm:$0xff]  }
 0x12a   :  { %v1098_v22 = vpop.f32.mrf.mxu1  ;;  %v1183_v52 = vadd.f32 %v1056_v30, %v1054_v8 }
 0x12b   :  { %v1058_v44 = vpop.f32.mrf.mxu0 }
 0x12c   :  { %v1099_v12 = vpop.f32.mrf.mxu1  ;;  %v1184_v57 = vadd.f32 %v1183_v52, %v1095_v51  ;;  %v2325_v52 = vld [vmem:[#allocation4 + $0x30] sm:$0xff]  }
 0x12e   :  { %v1185_v56 = vadd.f32 %v1184_v57, %v1097_v35  ;;  %v2328_v57 = vld [vmem:[#allocation4 + $0xe8] sm:$0xff]  }
 0x165   :  { %v1135_v55 = vpop.f32.mrf.mxu0 }
 0x166   :  { %v1136_v60 = vadd.f32 %v1135_v55, %v358_v58  ;;  %v1176_v43 = vpop.f32.mrf.mxu1  ;;  %v2329_v58 = vld [vmem:[#allocation4 + $0x28] sm:$0xff]   ;;  %v2332_v55 = vld [vmem:[#allocation4 + $0xe0] sm:$0xff]  }
 0x167   :  { %v1137_v14 = vpop.f32.mrf.mxu0  ;;  %v1177_v15 = vadd.f32 %v1176_v43, %v366_v49  ;;  %v2330_v49 = vld [vmem:[#allocation4 + $0xa8] sm:$0xff]   ;;  %v2335_v43 = vld [vmem:[#allocation4 + $0x58] sm:$0xff]  }
 0x168   :  { %v1186_v4 = vadd.f32 %v1185_v56, %v1136_v60  ;;  %v1138_v61 = vadd.f32 %v1137_v14, %v362_v53  ;;  %v1178_v38 = vpop.f32.mrf.mxu1  ;;  %v2331_v53 = vld [vmem:[#allocation4 + $0x60] sm:$0xff]   ;;  %v2336_v14 = vld [vmem:[#allocation4 + $0xd8] sm:$0xff]  }
 0x169   :  { %v1139_v40 = vpop.f32.mrf.mxu0  ;;  %v1179_v25 = vadd.f32 %v1178_v38, %v370_v62  ;;  %v2333_v56 = vld [vmem:[#allocation4 + $0x20] sm:$0xff]   ;;  %v2340_v62 = vld [vmem:[#allocation4 + $0xd0] sm:$0xff]  }
 0x16a   :  { %v1187_v63 = vadd.f32 %v1186_v4, %v1138_v61  ;;  %v1180_v20 = vpop.f32.mrf.mxu1  ;;  %v2337_v4 = vld [vmem:[#allocation4 + $0x18] sm:$0xff]   ;;  %v2341_v38 = vld [vmem:[#allocation4 + $0x10] sm:$0xff]  }
 0x16b   :  { %v1140_v21 = vpop.f32.mrf.mxu0  ;;  %v2342_v40 = vld [vmem:[#allocation4 + $0x90] sm:$0xff]   ;;  %v2344_v20 = vld [vmem:[#allocation4 + $0xc8] sm:$0xff]  }
 0x16c   :  { %v1181_v41 = vpop.f32.mrf.mxu1  ;;  %v1188_v42 = vadd.f32 %v1187_v63, %v1177_v15  ;;  %v2343_v63 = vld [vmem:[#allocation4 + $0x48] sm:$0xff]  }
 0x16d   :  { %v2345_v21 = vld [vmem:[#allocation4 + $0x8] sm:$0xff]   ;;  %v2347_v41 = vld [vmem:[#allocation4 + $0x40] sm:$0xff]  }
 0x16e   :  { %v1189_v3 = vadd.f32 %v1188_v42, %v1179_v25  ;;  %v2348_v42 = vld [vmem:[#allocation4 + $0xc0] sm:$0xff]  }
 0x170   :  { %1190 = vadd.xlane.f32.xlu0 %v1189_v3  ;;  %v2349_v3 = vld [vmem:[#allocation4] sm:$0xff]  }
 0x1f9   :  { %v1191_v1 = vpop.xlane.xlu0 %1190 }
 0x1fa   :  { %v1193_v2 = vmul.f32 0.0009765625, %v1191_v1 }
 0x1fc   :  { %v2827_v23 = vsub.f32 %v1054_v8, %v1193_v2  ;;  %v2829_v24 = vsub.f32 %v1056_v30, %v1193_v2  ;;  %v2831_v9 = vsub.f32 %v1095_v51, %v1193_v2  ;;  %v2833_v17 = vsub.f32 %v1097_v35, %v1193_v2  ;;  %v2323_v30 = vld [vmem:[#allocation4 + $0x70] sm:$0xff]   ;;  %v2327_v35 = vld [vmem:[#allocation4 + $0x68] sm:$0xff]  }
 0x1fd   :  { %v2839_v45 = vsub.f32 %v1136_v60, %v1193_v2  ;;  %v2843_v47 = vsub.f32 %v1138_v61, %v1193_v2  ;;  %v2847_v11 = vsub.f32 %v1177_v15, %v1193_v2  ;;  %v2851_v12 = vsub.f32 %v1179_v25, %v1193_v2  ;;  %v2324_v51 = vld [vmem:[#allocation4 + $0xf0] sm:$0xff]   ;;  %2227 = vmatprep.subr.bf16.mxu0 %v2323_v30  ;;  %v2334_v60 = vld [vmem:[#allocation4 + $0xa0] sm:$0xff]   ;;  %v2338_v15 = vld [vmem:[#allocation4 + $0x98] sm:$0xff]  }
 0x1fe   :  { %v1202_v18 = vmul.f32 %v2827_v23, %v2827_v23  ;;  %v1203_v26 = vmul.f32 %v2829_v24, %v2829_v24  ;;  %v1204_v46 = vmul.f32 %v2831_v9, %v2831_v9  ;;  %v1205_v50 = vmul.f32 %v2833_v17, %v2833_v17  ;;  %2249 = vmatprep.subr.bf16.mxu1 %v2324_v51  ;;  %v2339_v61 = vld [vmem:[#allocation4 + $0x50] sm:$0xff]   ;;  %v2346_v25 = vld [vmem:[#allocation4 + $0x88] sm:$0xff]  }
 0x1ff   :  { %v1206_v22 = vmul.f32 %v2839_v45, %v2839_v45  ;;  %v1207_v7 = vmul.f32 %v2843_v47, %v2843_v47  ;;  %v1208_v32 = vmul.f32 %v2847_v11, %v2847_v11  ;;  %v1209_v36 = vmul.f32 %v2851_v12, %v2851_v12  ;;  %2228 = vmatpush3.bf16.msra.mxu0 %v2325_v52 }
 0x200   :  { %v1210_v5 = vadd.f32 %v1203_v26, %v1202_v18  ;;  %2250 = vmatpush3.bf16.msra.mxu1 %v2326_v16  ;;  %2229 = vmatprep.subr.bf16.mxu0 %v2327_v35  ;;  %v2862_v18 = vld [vmem:[%s2928_s3] sm:$0xff] }
 0x201   :  { %2251 = vmatprep.subr.bf16.mxu1 %v2328_v57  ;;  %v2867_v26 = vld [vmem:[%s2929_s4] sm:$0xff] }
 0x202   :  { %v1211_v10 = vadd.f32 %v1210_v5, %v1204_v46  ;;  %v1235_v46 = vrot.slane %v2862_v18, %v2800_v28  ;;  %v1243_v5 = vrot.slane %v2862_v18, %v2808_v48 }
 0x203   :  { %2230 = vmatpush3.bf16.msra.mxu0 %v2329_v58 }
 0x204   :  { %v1212_v44 = vadd.f32 %v1211_v10, %v1205_v50  ;;  %2252 = vmatpush3.bf16.msra.mxu1 %v2330_v49  ;;  %2231 = vmatprep.subr.bf16.mxu0 %v2331_v53  ;;  %v1239_v50 = vrot.slane %v2862_v18, %v2802_v29  ;;  %v1247_v10 = vrot.slane %v2862_v18, %v2812_v33 }
 0x205   :  { %2253 = vmatprep.subr.bf16.mxu1 %v2332_v55 }
 0x206   :  { %v1213_v27 = vadd.f32 %v1212_v44, %v1206_v22  ;;  %v1255_v22 = vrot.slane %v2862_v18, %v2819_v39  ;;  %v1263_v44 = vrot.slane %v2862_v18, %v2824_v54 }
 0x207   :  { %2232 = vmatpush3.bf16.msra.mxu0 %v2333_v56 }
 0x208   :  { %v1214_v6 = vadd.f32 %v1213_v27, %v1207_v7  ;;  %2254 = vmatpush3.bf16.msra.mxu1 %v2334_v60  ;;  %2233 = vmatprep.subr.bf16.mxu0 %v2335_v43  ;;  %v1289_v27 = vrot.slane %v2867_v26, %v2802_v29 }
 0x209   :  { %2255 = vmatprep.subr.bf16.mxu1 %v2336_v14 }
 0x20a   :  { %v1215_v8 = vadd.f32 %v1214_v6, %v1208_v32  ;;  %v1297_v32 = vrot.slane %v2867_v26, %v2812_v33  ;;  %v1285_v6 = vrot.slane %v2867_v26, %v2800_v28  ;;  %v1305_v28 = vrot.slane %v2867_v26, %v2819_v39 }
 0x20b   :  { %2234 = vmatpush3.bf16.msra.mxu0 %v2337_v4 }
 0x20c   :  { %v1216_v13 = vadd.f32 %v1215_v8, %v1209_v36  ;;  %2256 = vmatpush3.bf16.msra.mxu1 %v2338_v15  ;;  %2235 = vmatprep.subr.bf16.mxu0 %v2339_v61  ;;  %v1293_v36 = vrot.slane %v2867_v26, %v2808_v48  ;;  %v2353_v61 = vld [vmem:[#allocation4 + $0x138] sm:$0xff]  }
 0x20d   :  { %2257 = vmatprep.subr.bf16.mxu1 %v2340_v62  ;;  %v2354_v62 = vld [vmem:[#allocation4 + $0x1b8] sm:$0xff]  }
 0x20e   :  { %1217 = vadd.xlane.f32.xlu0 %v1216_v13 }
 0x20f   :  { %2236 = vmatpush3.bf16.msra.mxu0 %v2341_v38  ;;  %v2355_v38 = vld [vmem:[#allocation4 + $0x170] sm:$0xff]  }
 0x210   :  { %2258 = vmatpush3.bf16.msra.mxu1 %v2342_v40  ;;  %2237 = vmatprep.subr.bf16.mxu0 %v2343_v63  ;;  %v2356_v40 = vld [vmem:[#allocation4 + $0x1f0] sm:$0xff]  }
 0x211   :  { %2259 = vmatprep.subr.bf16.mxu1 %v2344_v20 }
 0x213   :  { %2238 = vmatpush3.bf16.msra.mxu0 %v2345_v21  ;;  %v2357_v21 = vld [vmem:[#allocation4 + $0x130] sm:$0xff]  }
 0x214   :  { %2260 = vmatpush3.bf16.msra.mxu1 %v2346_v25  ;;  %2239 = vmatprep.subr.bf16.mxu0 %v2347_v41  ;;  %v2358_v25 = vld [vmem:[#allocation4 + $0x1b0] sm:$0xff]   ;;  %v2359_v41 = vld [vmem:[#allocation4 + $0x168] sm:$0xff]  }
 0x215   :  { %2261 = vmatprep.subr.bf16.mxu1 %v2348_v42  ;;  %v2360_v42 = vld [vmem:[#allocation4 + $0x1e8] sm:$0xff]  }
 0x217   :  { %2240 = vmatpush3.bf16.msra.mxu0 %v2349_v3  ;;  %v2361_v3 = vld [vmem:[#allocation4 + $0x128] sm:$0xff]  }
 0x218   :  { %2262 = vmatpush3.bf16.msra.mxu1 %v2350_v59  ;;  %2269 = vmatprep.subr.bf16.mxu0 %v2351_v0  ;;  %v2362_v59 = vld [vmem:[#allocation4 + $0x1a8] sm:$0xff]   ;;  %v2363_v0 = vld [vmem:[#allocation4 + $0x160] sm:$0xff]  }
 0x219   :  { %2291 = vmatprep.subr.bf16.mxu1 %v2352_v31  ;;  %v2364_v31 = vld [vmem:[#allocation4 + $0x1e0] sm:$0xff]  }
 0x297   :  { %v1218_v19 = vpop.xlane.xlu0 %1217 }
 0x298   :  { %v1219_v1 = vmul.f32 0.0009765625, %v1218_v19  ;;  %v2365_v19 = vld [vmem:[#allocation4 + $0x120] sm:$0xff]  }
 0x29a   :  { %v1220_v2 = vadd.f32 1e-05, %v1219_v1  ;;  %v2366_v1 = vld [vmem:[#allocation4 + $0x1a0] sm:$0xff]  }
 0x29c   :  { %2383 = vrsqrt.f32 %v1220_v2  ;;  %v2367_v2 = vld [vmem:[#allocation4 + $0x158] sm:$0xff]  }
 0x2a9   :  { %v2881_v7 = vpop.eup %2383 }
 0x2aa   :  { %v1223_v8 = vmul.f32 %v2881_v7, %v2829_v24  ;;  %v1225_v13 = vmul.f32 %v2881_v7, %v2833_v17  ;;  %v1222_v30 = vmul.f32 %v2881_v7, %v2827_v23  ;;  %v1224_v29 = vmul.f32 %v2881_v7, %v2831_v9 }
 0x2ab   :  { %v1227_v33 = vmul.f32 %v2881_v7, %v2843_v47  ;;  %v1229_v48 = vmul.f32 %v2881_v7, %v2851_v12  ;;  %v1313_v24 = vrot.slane %v2867_v26, %v2824_v54 }
 0x2ac   :  { %v1273_v51 = vmul.f32 %v1239_v50, %v1223_v8  ;;  %v1275_v17 = vmul.f32 %v1247_v10, %v1225_v13  ;;  %v1272_v52 = vmul.f32 %v1235_v46, %v1222_v30  ;;  %v1274_v16 = vmul.f32 %v1243_v5, %v1224_v29  ;;  %v2368_v46 = vld [vmem:[#allocation4 + $0x1d8] sm:$0xff]   ;;  %v2374_v8 = vld [vmem:[#allocation4 + $0x190] sm:$0xff]   ;;  %v2376_v30 = vld [vmem:[#allocation4 + $0x1c8] sm:$0xff]  }
 0x2ad   :  { %v1277_v23 = vmul.f32 %v1255_v22, %v1227_v33  ;;  %v1279_v35 = vmul.f32 %v1263_v44, %v1229_v48  ;;  %v1251_v5 = vrot.slane %v2862_v18, %v2815_v37  ;;  %v2369_v50 = vld [vmem:[#allocation4 + $0x118] sm:$0xff]   ;;  %v1259_v22 = vrot.slane %v2862_v18, %v2817_v34  ;;  %v2371_v44 = vld [vmem:[#allocation4 + $0x150] sm:$0xff]   ;;  %v2375_v18 = vld [vmem:[#allocation4 + $0x148] sm:$0xff]  }
 0x2ae   :  { %v1323_v57 = vadd.f32 %v1289_v27, %v1273_v51  ;;  %v1325_v9 = vadd.f32 %v1297_v32, %v1275_v17  ;;  %v1322_v58 = vadd.f32 %v1285_v6, %v1272_v52  ;;  %v1324_v49 = vadd.f32 %v1293_v36, %v1274_v16  ;;  %v2370_v10 = vld [vmem:[#allocation4 + $0x198] sm:$0xff]   ;;  %v2372_v27 = vld [vmem:[#allocation4 + $0x1d0] sm:$0xff]   ;;  %v2380_v48 = vld [vmem:[#allocation4 + $0x1c0] sm:$0xff]  }
 0x2af   :  { %v1327_v47 = vadd.f32 %v1305_v28, %v1277_v23  ;;  %v1329_v53 = vadd.f32 %v1313_v24, %v1279_v35  ;;  %v1226_v32 = vmul.f32 %v2881_v7, %v2839_v45  ;;  %v1228_v6 = vmul.f32 %v2881_v7, %v2847_v11  ;;  %v2373_v36 = vld [vmem:[#allocation4 + $0x110] sm:$0xff]   ;;  %v2377_v45 = vld [vmem:[#allocation4 + $0x108] sm:$0xff]   ;;  %v2379_v7 = vld [vmem:[#allocation4 + $0x140] sm:$0xff]  }
 0x2b0   :  { %v1331_v55 = vmax.f32 %v1323_v57, 0.0  ;;  %v1333_v39 = vmax.f32 %v1325_v9, 0.0  ;;  %v1330_v56 = vmax.f32 %v1322_v58, 0.0  ;;  %v1332_v60 = vmax.f32 %v1324_v49, 0.0  ;;  %v2378_v11 = vld [vmem:[#allocation4 + $0x188] sm:$0xff]   ;;  %v2382_v17 = vld [vmem:[#allocation4 + $0x180] sm:$0xff]  }
 0x2b1   :  { %v1335_v12 = vmax.f32 %v1327_v47, 0.0  ;;  %v1337_v43 = vmax.f32 %v1329_v53, 0.0  ;;  %v1301_v13 = vrot.slane %v2867_v26, %v2815_v37  ;;  %v1276_v29 = vmul.f32 %v1251_v5, %v1226_v32  ;;  %v2381_v37 = vld [vmem:[#allocation4 + $0x100] sm:$0xff]  }
 0x2b2   :  { %v1339_v14 = vpack.c.bf16 %v1331_v55, %v1331_v55  ;;  %v1341_v54 = vpack.c.bf16 %v1333_v39, %v1333_v39  ;;  %v1338_v4 = vpack.c.bf16 %v1330_v56, %v1330_v56  ;;  %v1340_v15 = vpack.c.bf16 %v1332_v60, %v1332_v60  ;;  %v2160_v39 = vld [vmem:[%s2931_s6] ss:$0 sm:$0xff] }
 0x2b3   :  { %v1343_v63 = vpack.c.bf16 %v1335_v12, %v1335_v12  ;;  %v1345_v20 = vpack.c.bf16 %v1337_v43, %v1337_v43  ;;  %v1278_v33 = vmul.f32 %v1259_v22, %v1228_v6  ;;  %v1309_v28 = vrot.slane %v2867_v26, %v2817_v34 }
 0x2b4   :  { %1897 = vmatprep.mubr.bf16.mxu0 %v1339_v14  ;;  %1937 = vmatprep.mubr.bf16.mxu1 %v1341_v54  ;;  %v1326_v24 = vadd.f32 %v1301_v13, %v1276_v29 }
 0x2b5   :  { %1898 = vmatmul.mubr.bf16.vlgmr.msra.gmra.mxu0 %v1338_v4  ;;  %1938 = vmatmul.mubr.bf16.vlgmr.msra.gmra.mxu1 %v1340_v15  ;;  %v1328_v51 = vadd.f32 %v1309_v28, %v1278_v33 }
 0x2b6   :  { %2270 = vmatpush3.bf16.msra.mxu0 %v2353_v61  ;;  %2292 = vmatpush3.bf16.msra.mxu1 %v2354_v62  ;;  %v1334_v52 = vmax.f32 %v1326_v24, 0.0 }
 0x2b7   :  { %1977 = vmatprep.mubr.bf16.mxu0 %v1343_v63  ;;  %2017 = vmatprep.mubr.bf16.mxu1 %v1345_v20  ;;  %v1336_v16 = vmax.f32 %v1328_v51, 0.0 }
 0x2b8   :  { %2271 = vmatprep.subr.bf16.mxu0 %v2355_v38  ;;  %2293 = vmatprep.subr.bf16.mxu1 %v2356_v40  ;;  %v1342_v34 = vpack.c.bf16 %v1334_v52, %v1334_v52 }
 0x2b9   :  { %v1344_v26 = vpack.c.bf16 %v1336_v16, %v1336_v16 }
 0x2ba   :  { %2272 = vmatpush3.bf16.msra.mxu0 %v2357_v21  ;;  %2294 = vmatpush3.bf16.msra.mxu1 %v2358_v25 }
 0x2bb   :  { %2273 = vmatprep.subr.bf16.mxu0 %v2359_v41  ;;  %2295 = vmatprep.subr.bf16.mxu1 %v2360_v42 }
 0x2be   :  { %2274 = vmatpush3.bf16.msra.mxu0 %v2361_v3  ;;  %2296 = vmatpush3.bf16.msra.mxu1 %v2362_v59 }
 0x2bf   :  { %2275 = vmatprep.subr.bf16.mxu0 %v2363_v0  ;;  %2297 = vmatprep.subr.bf16.mxu1 %v2364_v31 }
 0x2c2   :  { %2276 = vmatpush3.bf16.msra.mxu0 %v2365_v19  ;;  %2298 = vmatpush3.bf16.msra.mxu1 %v2366_v1 }
 0x2c3   :  { %2277 = vmatprep.subr.bf16.mxu0 %v2367_v2  ;;  %2299 = vmatprep.subr.bf16.mxu1 %v2368_v46 }
 0x2c6   :  { %2278 = vmatpush3.bf16.msra.mxu0 %v2369_v50  ;;  %2300 = vmatpush3.bf16.msra.mxu1 %v2370_v10 }
 0x2c7   :  { %2279 = vmatprep.subr.bf16.mxu0 %v2371_v44  ;;  %2301 = vmatprep.subr.bf16.mxu1 %v2372_v27 }
 0x2ca   :  { %2280 = vmatpush3.bf16.msra.mxu0 %v2373_v36  ;;  %2302 = vmatpush3.bf16.msra.mxu1 %v2374_v8 }
 0x2cb   :  { %2281 = vmatprep.subr.bf16.mxu0 %v2375_v18  ;;  %2303 = vmatprep.subr.bf16.mxu1 %v2376_v30 }
 0x2ce   :  { %2282 = vmatpush3.bf16.msra.mxu0 %v2377_v45  ;;  %2304 = vmatpush3.bf16.msra.mxu1 %v2378_v11 }
 0x2cf   :  { %2283 = vmatprep.subr.bf16.mxu0 %v2379_v7  ;;  %2305 = vmatprep.subr.bf16.mxu1 %v2380_v48 }
 0x2d2   :  { %2284 = vmatpush3.bf16.msra.mxu0 %v2381_v37  ;;  %2306 = vmatpush3.bf16.msra.mxu1 %v2382_v17 }
 0x2d5   :  { %1978 = vmatmul.mubr.bf16.vlgmr.msra.gmra.mxu0 %v1342_v34  ;;  %2018 = vmatmul.mubr.bf16.vlgmr.msra.gmra.mxu1 %v1344_v26 }
 0x375   :  { %v2241_v23 = vpop.f32.mrf.mxu0  ;;  %v2263_v35 = vpop.f32.mrf.mxu1 }
 0x377   :  { %v2242_v57 = vpop.f32.mrf.mxu0  ;;  %v2264_v9 = vpop.f32.mrf.mxu1 }
 0x378   :  { %v2243_v55 = vadd.f32 %v2242_v57, %v2241_v23  ;;  %v2265_v43 = vadd.f32 %v2264_v9, %v2263_v35 }
 0x379   :  { %v2244_v58 = vpop.f32.mrf.mxu0  ;;  %v2266_v49 = vpop.f32.mrf.mxu1 }
 0x37a   :  { %v1900_v56 = vadd.f32 %v2243_v55, %v2160_v39 }
 0x37b   :  { %v2245_v47 = vpop.f32.mrf.mxu0  ;;  %v2267_v53 = vpop.f32.mrf.mxu1 }
 0x37c   :  { %v1940_v4 = vadd.f32 %v2265_v43, %v1900_v56 }
 0x395   :  { %v2285_v60 = vpop.f32.mrf.mxu0  ;;  %v2307_v12 = vpop.f32.mrf.mxu1 }
 0x397   :  { %v2286_v14 = vpop.f32.mrf.mxu0  ;;  %v2308_v54 = vpop.f32.mrf.mxu1 }
 0x398   :  { %v2287_v15 = vadd.f32 %v2286_v14, %v2285_v60  ;;  %v2309_v40 = vadd.f32 %v2308_v54, %v2307_v12 }
 0x399   :  { %v2288_v61 = vpop.f32.mrf.mxu0  ;;  %v2310_v62 = vpop.f32.mrf.mxu1 }
 0x39a   :  { %v1980_v38 = vadd.f32 %v2287_v15, %v1940_v4 }
 0x39b   :  { %v2289_v63 = vpop.f32.mrf.mxu0  ;;  %v2311_v20 = vpop.f32.mrf.mxu1 }
 0x39c   :  { %v2020_v21 = vadd.f32 %v2309_v40, %v1980_v38 }
 0x39e   :  { %2025 = vst [vmem:[%s2932_s7] sm:$0xff] %v2020_v21 }
 0x39f   :  { %2030 = vsyncpa [#allocation3], 1 }
 0x3a0   :  { %2031 = vsyncpa [#allocation5], 1 }

</bundles_post_ra>
